<compile_context>
chip_gen: v7x
topology: tpu7x:2x2x1
jax: 0.10.0
libtpu: 0.0.40
codegen_flags: <defaults>
</compile_context>

<pallas_src>
import jax
import jax.numpy as jnp
from jax.experimental import pallas as pl
from jax.experimental.pallas import tpu as pltpu


def gat_kernel(x_ref, xt_ref, w2_ref, w2t_ref, asrc_ref, adst_ref, bias_ref,
               mask_ref, o_ref):
    # x_ref:    (G*N, Cin)        G graphs of this block, node-major
    # xt_ref:   (Cin, G*N)        same data, transposed (built in the wrapper)
    # w2_ref:   (Cin, H*Cout)     all heads fused into one projection
    # w2t_ref:  (H*Cout, Cin)     transposed projection
    # asrc_ref: (1, H*Cout)       per-head source attention vectors, flattened
    # adst_ref: (H*Cout, 1)       per-head destination attention vectors, flattened
    # bias_ref: (Cout, 1)
    # mask_ref: (G*N, G*N)        additive mask in [source j, dest i] orientation:
    #                             0 where edge j->i exists in the same graph
    #                             (incl. self loop), -1e9 otherwise (incl. cross-graph)
    # o_ref:    (Cout, G*N)       transposed, lane-dense output slab
    GN, _ = x_ref.shape
    HC = w2_ref.shape[1]
    Cout = bias_ref.shape[0]
    H = HC // Cout

    x = x_ref[...]                     # (GN, Cin)
    xt = xt_ref[...]                   # (Cin, GN)
    mask = mask_ref[...]               # (GN, GN)
    asrc = asrc_ref[...]               # (1, HC)
    adst = adst_ref[...]               # (HC, 1)

    # One fused projection for all heads, in both layouts (MXU is idle anyway;
    # having both layouts removes every in-kernel transpose).
    xp = jnp.dot(x, w2_ref[...], preferred_element_type=jnp.float32)    # (GN, HC)
    xpt = jnp.dot(w2t_ref[...], xt, preferred_element_type=jnp.float32)  # (HC, GN)

    acc_t = jnp.zeros((Cout, GN), jnp.float32)
    for hd in range(H):                # H is small & static -> unrolled
        lo = hd * Cout
        xp_h = xp[:, lo:lo + Cout]     # (GN, Cout)   rows = source nodes j
        xpt_h = xpt[lo:lo + Cout, :]   # (Cout, GN)   cols = source nodes j

        # alpha_src[j] as a column, alpha_dst[i] as a row -> e[j, i] via broadcast add
        a_src = jnp.sum(xp_h * asrc[:, lo:lo + Cout], axis=-1, keepdims=True)   # (GN, 1)
        a_dst = jnp.sum(xpt_h * adst[lo:lo + Cout, :], axis=0, keepdims=True)   # (1, GN)

        e = a_src + a_dst                               # (GN, GN), e[j, i]
        e = jnp.where(e > 0, e, 0.2 * e) + mask         # leaky_relu(0.2) + mask
        # softmax over source nodes j (axis 0) for every destination i
        e = e - jnp.max(e, axis=0, keepdims=True)
        p = jnp.exp(e)
        denom = jnp.sum(p, axis=0, keepdims=True)       # (1, GN)
        p = p * pl.reciprocal(denom, approx=True)
        # out^T[c, i] = sum_j xp[j, c] * p[j, i]
        acc_t = acc_t + jnp.dot(xpt_h, p, preferred_element_type=jnp.float32)

    o = acc_t * (1.0 / H) + bias_ref[...]               # mean over heads + bias
    o = jnp.where(o > 0, o, jnp.exp(o) - 1.0)           # F.elu
    o_ref[...] = o.astype(o_ref.dtype)                  # lane-dense (Cout, GN) store


def gat_forward(adj, h, w, att_src, att_dst, bias):
    B, N, T, Cin = h.shape
    H, _, Cout = w.shape
    BT = B * T
    # Two grid blocks when possible: one per TensorCore on v7x, negligible overhead
    # on single-core chips. Everything fits in VMEM trivially at these sizes.
    NB = 2 if BT % 2 == 0 else 1
    G = BT // NB
    GN = G * N

    # Fused per-head parameters.
    w2 = jnp.transpose(w, (1, 0, 2)).reshape(Cin, H * Cout)     # (Cin, H*Cout)
    w2_t = w2.T                                                 # (H*Cout, Cin)
    asrc = att_src.reshape(1, H * Cout)
    adst = att_dst.reshape(H * Cout, 1)
    bias_col = bias.reshape(Cout, 1)

    # dense_to_sparse(adj): edge (j -> i) exists iff adj[j, i] != 0; GATConv adds
    # self loops. Build the mask directly in [source j, dest i] orientation and
    # expand it block-diagonally over the G graphs of one block (all graphs share
    # the same adjacency, so both grid blocks reuse the same mask).
    mask_local = (adj != 0.0) | jnp.eye(N, dtype=bool)                       # (N, N)
    diag_sel = jnp.kron(jnp.eye(G, dtype=jnp.float32),
                        jnp.ones((N, N), jnp.float32)) > 0                   # (GN, GN)
    allowed = diag_sel & jnp.tile(mask_local, (G, G))
    mask_big = jnp.where(allowed, 0.0, -1e9).astype(jnp.float32)             # (GN, GN)

    x = jnp.transpose(h, (0, 2, 1, 3)).reshape(BT * N, Cin)    # (BT*N, Cin)
    x_t = x.T                                                  # (Cin, BT*N)

    out_t = pl.pallas_call(
        gat_kernel,
        out_shape=jax.ShapeDtypeStruct((Cout, BT * N), jnp.float32),
        grid_spec=pltpu.PrefetchScalarGridSpec(
            num_scalar_prefetch=0,
            grid=(NB,),
            in_specs=[
                pl.BlockSpec((GN, Cin), lambda t: (t, 0)),
                pl.BlockSpec((Cin, GN), lambda t: (0, t)),
                pl.BlockSpec((Cin, H * Cout), lambda t: (0, 0)),
                pl.BlockSpec((H * Cout, Cin), lambda t: (0, 0)),
                pl.BlockSpec((1, H * Cout), lambda t: (0, 0)),
                pl.BlockSpec((H * Cout, 1), lambda t: (0, 0)),
                pl.BlockSpec((Cout, 1), lambda t: (0, 0)),
                pl.BlockSpec((GN, GN), lambda t: (0, 0)),
            ],
            out_specs=pl.BlockSpec((Cout, GN), lambda t: (0, t)),
        ),
        compiler_params=pltpu.CompilerParams(dimension_semantics=("parallel",)),
    )(x, x_t, w2, w2_t, asrc, adst, bias_col, mask_big)

    # Layout plumbing back to the module's output layout.
    out = out_t.T.reshape(B, T, N, Cout)
    return jnp.transpose(out, (0, 2, 1, 3))                    # (B, N, T, Cout)


def gat_reference(adj, h, w, att_src, att_dst, bias):
    """Pure-JAX reference of the same forward, for correctness check."""
    B, N, T, Cin = h.shape
    H, _, Cout = w.shape
    mask = (jnp.transpose(adj) != 0.0) | jnp.eye(N, dtype=bool)
    neg = jnp.where(mask, 0.0, -1e9)
    x = jnp.transpose(h, (0, 2, 1, 3)).reshape(B * T, N, Cin)
    acc = jnp.zeros((B * T, N, Cout), jnp.float32)
    for hd in range(H):
        xp = x @ w[hd]
        a_s = jnp.sum(xp * att_src[hd], -1)
        a_d = jnp.sum(xp * att_dst[hd], -1)
        e = a_d[:, :, None] + a_s[:, None, :]
        e = jnp.where(e > 0, e, 0.2 * e) + neg[None]
        p = jax.nn.softmax(e, axis=-1)
        acc = acc + p @ xp
    o = acc / H + bias
    o = jnp.where(o > 0, o, jnp.exp(o) - 1.0)
    return jnp.transpose(o.reshape(B, T, N, Cout), (0, 2, 1, 3))


if __name__ == "__main__":
    B, N, T = 2, 16, 8
    C_IN, C_OUT, HEADS = 4, 4, 2

    key = jax.random.PRNGKey(0)
    k_adj, k_h, k_w, k_as, k_ad, k_b = jax.random.split(key, 6)

    # Random sparse-ish adjacency (N, N) and input features (B, N, T, C_in)
    adj = (jax.random.uniform(k_adj, (N, N)) > 0.6).astype(jnp.float32)
    h = jax.random.normal(k_h, (B, N, T, C_IN), dtype=jnp.float32)

    # Deterministic GATConv parameters (glorot-ish), per-head layout (H, Cin, Cout)
    glorot = (6.0 / (C_IN + HEADS * C_OUT)) ** 0.5
    w = jax.random.uniform(k_w, (HEADS, C_IN, C_OUT), minval=-glorot, maxval=glorot,
                           dtype=jnp.float32)
    att_src = jax.random.uniform(k_as, (HEADS, C_OUT), minval=-glorot, maxval=glorot,
                                 dtype=jnp.float32)
    att_dst = jax.random.uniform(k_ad, (HEADS, C_OUT), minval=-glorot, maxval=glorot,
                                 dtype=jnp.float32)
    bias = 0.1 * jax.random.normal(k_b, (1, C_OUT), dtype=jnp.float32)

    out = gat_forward(adj, h, w, att_src, att_dst, bias)
    out = jax.block_until_ready(out)

    ref = gat_reference(adj, h, w, att_src, att_dst, bias)
    assert out.shape == (B, N, T, C_OUT), out.shape
    # Tolerance relaxed slightly (2e-3) because the kernel uses the EUP approximate
    # reciprocal for the softmax denominator (per perf guidance).
    assert jnp.allclose(out, ref, atol=2e-3, rtol=2e-3), \
        float(jnp.max(jnp.abs(out - ref)))

    print("KERNEL_OK")
</pallas_src>

<mosaic_0001>
module attributes {stable_mosaic.version = 11 : i64} {
  func.func @gat_kernel(%arg0: i32, %arg1: memref<128x4xf32, #tpu.memory_space<vmem>>, %arg2: memref<4x128xf32, #tpu.memory_space<vmem>>, %arg3: memref<4x8xf32, #tpu.memory_space<vmem>>, %arg4: memref<8x4xf32, #tpu.memory_space<vmem>>, %arg5: memref<1x8xf32, #tpu.memory_space<vmem>>, %arg6: memref<8x1xf32, #tpu.memory_space<vmem>>, %arg7: memref<4x1xf32, #tpu.memory_space<vmem>>, %arg8: memref<128x128xf32, #tpu.memory_space<vmem>>, %arg9: memref<4x128xf32, #tpu.memory_space<vmem>>) attributes {dimension_semantics = [#tpu.dimension_semantics<parallel>], iteration_bounds = array<i64: 2>, scalar_prefetch = 0 : i64, scratch_operands = 0 : i64, tpu.core_type = #tpu.core_type<tc>, window_params = [{transform_indices = @transform_0, window_bounds = array<i64: 128, 4>}, {transform_indices = @transform_1, window_bounds = array<i64: 4, 128>}, {pipeline_mode = #tpu.pipeline_mode<synchronous>, transform_indices = @transform_2, window_bounds = array<i64: 4, 8>}, {pipeline_mode = #tpu.pipeline_mode<synchronous>, transform_indices = @transform_3, window_bounds = array<i64: 8, 4>}, {pipeline_mode = #tpu.pipeline_mode<synchronous>, transform_indices = @transform_4, window_bounds = array<i64: 1, 8>}, {pipeline_mode = #tpu.pipeline_mode<synchronous>, transform_indices = @transform_5, window_bounds = array<i64: 8, 1>}, {pipeline_mode = #tpu.pipeline_mode<synchronous>, transform_indices = @transform_6, window_bounds = array<i64: 4, 1>}, {pipeline_mode = #tpu.pipeline_mode<synchronous>, transform_indices = @transform_7, window_bounds = array<i64: 128, 128>}, {transform_indices = @transform_8, window_bounds = array<i64: 4, 128>}]} {
    %c0 = arith.constant 0 : index
    %c0_0 = arith.constant 0 : index
    %0 = vector.load %arg1[%c0, %c0_0] : memref<128x4xf32, #tpu.memory_space<vmem>>, vector<128x4xf32>
    %c0_1 = arith.constant 0 : index
    %c0_2 = arith.constant 0 : index
    %1 = vector.load %arg2[%c0_1, %c0_2] : memref<4x128xf32, #tpu.memory_space<vmem>>, vector<4x128xf32>
    %c0_3 = arith.constant 0 : index
    %c0_4 = arith.constant 0 : index
    %2 = vector.load %arg8[%c0_3, %c0_4] : memref<128x128xf32, #tpu.memory_space<vmem>>, vector<128x128xf32>
    %c0_5 = arith.constant 0 : index
    %c0_6 = arith.constant 0 : index
    %3 = vector.load %arg5[%c0_5, %c0_6] : memref<1x8xf32, #tpu.memory_space<vmem>>, vector<1x8xf32>
    %c0_7 = arith.constant 0 : index
    %c0_8 = arith.constant 0 : index
    %4 = vector.load %arg6[%c0_7, %c0_8] : memref<8x1xf32, #tpu.memory_space<vmem>>, vector<8x1xf32>
    %c0_9 = arith.constant 0 : index
    %c0_10 = arith.constant 0 : index
    %5 = vector.load %arg3[%c0_9, %c0_10] : memref<4x8xf32, #tpu.memory_space<vmem>>, vector<4x8xf32>
    %cst = arith.constant dense<0.000000e+00> : vector<128x8xf32>
    %6 = tpu.matmul %0, %5, %cst {dimension_numbers = #tpu.dot_dimension_numbers<[1], [0], [0], [1], [0, 0, 1, 1], [], []>} : vector<128x4xf32>, vector<4x8xf32>, vector<128x8xf32> -> vector<128x8xf32>
    %c0_11 = arith.constant 0 : index
    %c0_12 = arith.constant 0 : index
    %7 = vector.load %arg4[%c0_11, %c0_12] : memref<8x4xf32, #tpu.memory_space<vmem>>, vector<8x4xf32>
    %cst_13 = arith.constant dense<0.000000e+00> : vector<8x128xf32>
    %8 = tpu.matmul %7, %1, %cst_13 {dimension_numbers = #tpu.dot_dimension_numbers<[1], [0], [0], [1], [0, 0, 1, 1], [], []>} : vector<8x4xf32>, vector<4x128xf32>, vector<8x128xf32> -> vector<8x128xf32>
    %cst_14 = arith.constant 0.000000e+00 : f32
    %9 = vector.broadcast %cst_14 : f32 to vector<4x128xf32>
    %10 = vector.extract_strided_slice %6 {offsets = [0, 0], sizes = [128, 4], strides = [1, 1]} : vector<128x8xf32> to vector<128x4xf32>
    %11 = vector.extract_strided_slice %8 {offsets = [0, 0], sizes = [4, 128], strides = [1, 1]} : vector<8x128xf32> to vector<4x128xf32>
    %12 = vector.extract_strided_slice %3 {offsets = [0, 0], sizes = [1, 4], strides = [1, 1]} : vector<1x8xf32> to vector<1x4xf32>
    %13 = vector.broadcast %12 : vector<1x4xf32> to vector<128x4xf32>
    %14 = arith.mulf %10, %13 : vector<128x4xf32>
    %cst_15 = arith.constant dense<0.000000e+00> : vector<128xf32>
    %15 = vector.multi_reduction <add>, %14, %cst_15 [1] : vector<128x4xf32> to vector<128xf32>
    %16 = vector.shape_cast %15 : vector<128xf32> to vector<128x1xf32>
    %17 = vector.extract_strided_slice %4 {offsets = [0, 0], sizes = [4, 1], strides = [1, 1]} : vector<8x1xf32> to vector<4x1xf32>
    %18 = vector.broadcast %17 : vector<4x1xf32> to vector<4x128xf32>
    %19 = arith.mulf %11, %18 : vector<4x128xf32>
    %cst_16 = arith.constant dense<0.000000e+00> : vector<128xf32>
    %20 = vector.multi_reduction <add>, %19, %cst_16 [0] : vector<4x128xf32> to vector<128xf32>
    %21 = vector.shape_cast %20 : vector<128xf32> to vector<1x128xf32>
    %22 = vector.broadcast %16 : vector<128x1xf32> to vector<128x128xf32>
    %23 = vector.broadcast %21 : vector<1x128xf32> to vector<128x128xf32>
    %24 = arith.addf %22, %23 : vector<128x128xf32>
    %cst_17 = arith.constant 0.000000e+00 : f32
    %25 = vector.broadcast %cst_17 : f32 to vector<128x128xf32>
    %26 = arith.cmpf ogt, %24, %25 : vector<128x128xf32>
    %cst_18 = arith.constant 2.000000e-01 : f32
    %27 = vector.broadcast %cst_18 : f32 to vector<128x128xf32>
    %28 = arith.mulf %27, %24 : vector<128x128xf32>
    %29 = arith.select %26, %24, %28 : vector<128x128xi1>, vector<128x128xf32>
    %30 = arith.addf %29, %2 : vector<128x128xf32>
    %cst_19 = arith.constant dense<0xFF800000> : vector<128xf32>
    %31 = vector.multi_reduction <maximumf>, %30, %cst_19 [0] : vector<128x128xf32> to vector<128xf32>
    %32 = vector.shape_cast %31 : vector<128xf32> to vector<1x128xf32>
    %33 = vector.broadcast %32 : vector<1x128xf32> to vector<128x128xf32>
    %34 = arith.subf %30, %33 : vector<128x128xf32>
    %35 = math.exp %34 : vector<128x128xf32>
    %cst_20 = arith.constant dense<0.000000e+00> : vector<128xf32>
    %36 = vector.multi_reduction <add>, %35, %cst_20 [0] : vector<128x128xf32> to vector<128xf32>
    %37 = vector.shape_cast %36 : vector<128xf32> to vector<1x128xf32>
    %38 = tpu.reciprocal %37 {approx = true} : vector<1x128xf32> -> vector<1x128xf32>
    %39 = vector.broadcast %38 : vector<1x128xf32> to vector<128x128xf32>
    %40 = arith.mulf %35, %39 : vector<128x128xf32>
    %cst_21 = arith.constant dense<0.000000e+00> : vector<4x128xf32>
    %41 = tpu.matmul %11, %40, %cst_21 {dimension_numbers = #tpu.dot_dimension_numbers<[1], [0], [0], [1], [0, 0, 1, 1], [], []>} : vector<4x128xf32>, vector<128x128xf32>, vector<4x128xf32> -> vector<4x128xf32>
    %42 = arith.addf %9, %41 : vector<4x128xf32>
    %43 = vector.extract_strided_slice %6 {offsets = [0, 4], sizes = [128, 4], strides = [1, 1]} : vector<128x8xf32> to vector<128x4xf32>
    %44 = vector.extract_strided_slice %8 {offsets = [4, 0], sizes = [4, 128], strides = [1, 1]} : vector<8x128xf32> to vector<4x128xf32>
    %45 = vector.extract_strided_slice %3 {offsets = [0, 4], sizes = [1, 4], strides = [1, 1]} : vector<1x8xf32> to vector<1x4xf32>
    %46 = vector.broadcast %45 : vector<1x4xf32> to vector<128x4xf32>
    %47 = arith.mulf %43, %46 : vector<128x4xf32>
    %cst_22 = arith.constant dense<0.000000e+00> : vector<128xf32>
    %48 = vector.multi_reduction <add>, %47, %cst_22 [1] : vector<128x4xf32> to vector<128xf32>
    %49 = vector.shape_cast %48 : vector<128xf32> to vector<128x1xf32>
    %50 = vector.extract_strided_slice %4 {offsets = [4, 0], sizes = [4, 1], strides = [1, 1]} : vector<8x1xf32> to vector<4x1xf32>
    %51 = vector.broadcast %50 : vector<4x1xf32> to vector<4x128xf32>
    %52 = arith.mulf %44, %51 : vector<4x128xf32>
    %cst_23 = arith.constant dense<0.000000e+00> : vector<128xf32>
    %53 = vector.multi_reduction <add>, %52, %cst_23 [0] : vector<4x128xf32> to vector<128xf32>
    %54 = vector.shape_cast %53 : vector<128xf32> to vector<1x128xf32>
    %55 = vector.broadcast %49 : vector<128x1xf32> to vector<128x128xf32>
    %56 = vector.broadcast %54 : vector<1x128xf32> to vector<128x128xf32>
    %57 = arith.addf %55, %56 : vector<128x128xf32>
    %cst_24 = arith.constant 0.000000e+00 : f32
    %58 = vector.broadcast %cst_24 : f32 to vector<128x128xf32>
    %59 = arith.cmpf ogt, %57, %58 : vector<128x128xf32>
    %cst_25 = arith.constant 2.000000e-01 : f32
    %60 = vector.broadcast %cst_25 : f32 to vector<128x128xf32>
    %61 = arith.mulf %60, %57 : vector<128x128xf32>
    %62 = arith.select %59, %57, %61 : vector<128x128xi1>, vector<128x128xf32>
    %63 = arith.addf %62, %2 : vector<128x128xf32>
    %cst_26 = arith.constant dense<0xFF800000> : vector<128xf32>
    %64 = vector.multi_reduction <maximumf>, %63, %cst_26 [0] : vector<128x128xf32> to vector<128xf32>
    %65 = vector.shape_cast %64 : vector<128xf32> to vector<1x128xf32>
    %66 = vector.broadcast %65 : vector<1x128xf32> to vector<128x128xf32>
    %67 = arith.subf %63, %66 : vector<128x128xf32>
    %68 = math.exp %67 : vector<128x128xf32>
    %cst_27 = arith.constant dense<0.000000e+00> : vector<128xf32>
    %69 = vector.multi_reduction <add>, %68, %cst_27 [0] : vector<128x128xf32> to vector<128xf32>
    %70 = vector.shape_cast %69 : vector<128xf32> to vector<1x128xf32>
    %71 = tpu.reciprocal %70 {approx = true} : vector<1x128xf32> -> vector<1x128xf32>
    %72 = vector.broadcast %71 : vector<1x128xf32> to vector<128x128xf32>
    %73 = arith.mulf %68, %72 : vector<128x128xf32>
    %cst_28 = arith.constant dense<0.000000e+00> : vector<4x128xf32>
    %74 = tpu.matmul %44, %73, %cst_28 {dimension_numbers = #tpu.dot_dimension_numbers<[1], [0], [0], [1], [0, 0, 1, 1], [], []>} : vector<4x128xf32>, vector<128x128xf32>, vector<4x128xf32> -> vector<4x128xf32>
    %75 = arith.addf %42, %74 : vector<4x128xf32>
    %cst_29 = arith.constant 5.000000e-01 : f32
    %76 = vector.broadcast %cst_29 : f32 to vector<4x128xf32>
    %77 = arith.mulf %75, %76 : vector<4x128xf32>
    %c0_30 = arith.constant 0 : index
    %c0_31 = arith.constant 0 : index
    %78 = vector.load %arg7[%c0_30, %c0_31] : memref<4x1xf32, #tpu.memory_space<vmem>>, vector<4x1xf32>
    %79 = vector.broadcast %78 : vector<4x1xf32> to vector<4x128xf32>
    %80 = arith.addf %77, %79 : vector<4x128xf32>
    %cst_32 = arith.constant 0.000000e+00 : f32
    %81 = vector.broadcast %cst_32 : f32 to vector<4x128xf32>
    %82 = arith.cmpf ogt, %80, %81 : vector<4x128xf32>
    %83 = math.exp %80 : vector<4x128xf32>
    %cst_33 = arith.constant 1.000000e+00 : f32
    %84 = vector.broadcast %cst_33 : f32 to vector<4x128xf32>
    %85 = arith.subf %83, %84 : vector<4x128xf32>
    %86 = arith.select %82, %80, %85 : vector<4x128xi1>, vector<4x128xf32>
    %c0_34 = arith.constant 0 : index
    %c0_35 = arith.constant 0 : index
    %87 = vector.load %arg9[%c0_34, %c0_35] : memref<4x128xf32, #tpu.memory_space<vmem>>, vector<4x128xf32>
    tpu.vector_store %arg9[%c0_34, %c0_35], %86 {strides = array<i32>} : memref<4x128xf32, #tpu.memory_space<vmem>>, vector<4x128xf32>,
    return
  }
  func.func @transform_0(%arg0: i32) -> (i32, i32) {
    %c0_i32 = arith.constant 0 : i32
    %c0_i32_0 = arith.constant 0 : i32
    return %arg0, %c0_i32 : i32, i32
  }
  func.func @transform_1(%arg0: i32) -> (i32, i32) {
    %c0_i32 = arith.constant 0 : i32
    %c0_i32_0 = arith.constant 0 : i32
    return %c0_i32, %arg0 : i32, i32
  }
  func.func @transform_2(%arg0: i32) -> (i32, i32) {
    %c0_i32 = arith.constant 0 : i32
    %c0_i32_0 = arith.constant 0 : i32
    %c0_i32_1 = arith.constant 0 : i32
    return %c0_i32, %c0_i32_0 : i32, i32
  }
  func.func @transform_3(%arg0: i32) -> (i32, i32) {
    %c0_i32 = arith.constant 0 : i32
    %c0_i32_0 = arith.constant 0 : i32
    %c0_i32_1 = arith.constant 0 : i32
    return %c0_i32, %c0_i32_0 : i32, i32
  }
  func.func @transform_4(%arg0: i32) -> (i32, i32) {
    %c0_i32 = arith.constant 0 : i32
    %c0_i32_0 = arith.constant 0 : i32
    %c0_i32_1 = arith.constant 0 : i32
    return %c0_i32, %c0_i32_0 : i32, i32
  }
  func.func @transform_5(%arg0: i32) -> (i32, i32) {
    %c0_i32 = arith.constant 0 : i32
    %c0_i32_0 = arith.constant 0 : i32
    %c0_i32_1 = arith.constant 0 : i32
    return %c0_i32, %c0_i32_0 : i32, i32
  }
  func.func @transform_6(%arg0: i32) -> (i32, i32) {
    %c0_i32 = arith.constant 0 : i32
    %c0_i32_0 = arith.constant 0 : i32
    %c0_i32_1 = arith.constant 0 : i32
    return %c0_i32, %c0_i32_0 : i32, i32
  }
  func.func @transform_7(%arg0: i32) -> (i32, i32) {
    %c0_i32 = arith.constant 0 : i32
    %c0_i32_0 = arith.constant 0 : i32
    %c0_i32_1 = arith.constant 0 : i32
    return %c0_i32, %c0_i32_0 : i32, i32
  }
  func.func @transform_8(%arg0: i32) -> (i32, i32) {
    %c0_i32 = arith.constant 0 : i32
    %c0_i32_0 = arith.constant 0 : i32
    return %c0_i32, %arg0 : i32, i32
  }
}

</mosaic_0001>

<bundles_post_ra>
// kernel: tpu_custom_call.1
= control target key start
LH: loop header
LB: loop body
LE: loop exit
PB: predicated region body
PF: predicated region fallthrough
CT: control target
= control target key end

     0   :  { %13 = vsyncpa [#allocation3], 0  ;;  %s2607_s0 = inlined_call_operand.vmem [shape: f32[256,4], index: 0, kind: input, shape index: {}]   ;;  %s2608_s1 = inlined_call_operand.vmem [shape: f32[4,256], index: 1, kind: input, shape index: {}]   ;;  %s2609_s2 = inlined_call_operand.vmem [shape: f32[4,8], index: 2, kind: input, shape index: {}]   ;;  %s2610_s3 = inlined_call_operand.vmem [shape: f32[8,4], index: 3, kind: input, shape index: {}]   ;;  %s2611_s4 = inlined_call_operand.vmem [shape: f32[1,8], index: 4, kind: input, shape index: {}]   ;;  %s2612_s5 = inlined_call_operand.vmem [shape: f32[8,1], index: 5, kind: input, shape index: {}]   ;;  %s2613_s6 = inlined_call_operand.vmem [shape: f32[4,1], index: 6, kind: input, shape index: {}]   ;;  %s2614_s7 = inlined_call_operand.vmem [shape: f32[128,128], index: 7, kind: input, shape index: {}]   ;;  %s2615_s8 = inlined_call_operand.hbm [shape: f32[4,256], index: 8, kind: output, shape index: {}]  }
   0x1   :  { %15 = vsyncpa [#allocation3 + $0x1], 0  ;;  %s1922_s27 = smov 0   ;;  %s1924_s28 = smov 0  }
   0x2   :  { %s1926_s29 = smov 0   ;;  %s1928_s30 = smov 0  }
   0x3 LB: > { %s1943_s9 = sadd.s32 4294967295, %s1869_s30   ;;  %s1455_s10 = sadd.s32 4294967294, %s1869_s30   ;;  %s1869_s30 = sphi %s1928_s30, %s2621_s30   ;;  %s1865_s29 = sphi %s1926_s29, %s2620_s29   ;;  %s1861_s28 = sphi %s1924_s28, %s2619_s28   ;;  %s1857_s27 = sphi %s1922_s27, %s2618_s27  }
   0x4   : > { %s1947_s11 = sadd.s32 1, %s1869_s30   ;;  %s206_s12 = sadd.s32 1, %s1865_s29 }
   0x5   : > { %s203_s13 = ssub.s32 %s1869_s30, %s1947_s11  ;;  %p216_p0 = scmp.ne.s32.totalorder %s1865_s29, %s1861_s28 }
   0x6   : > { %p204_p1 = scmp.eq.s32.totalorder %s203_s13, 0  ;;  %p217_p2 = scmp.eq.s32.totalorder %s1943_s9, 1 }
   0x7   : > { %p222_p3 = scmp.ne.s32.totalorder %s1861_s28, %s1857_s27  ;;  %p223_p4 = scmp.eq.s32.totalorder %s1455_s10, 1 }
   0x8   : > { %s1958_s14 = scalar_select %p204_p1, %s1865_s29, %s206_s12  }
   0x9   : > { %p1960_p5 = por %p217_p2, %p216_p0  ;;  %p1964_p6 = por %p223_p4, %p222_p3 }
   0xa   : > { %p1458_p7 = scmp.ge.s32.totalorder %s1869_s30, 1  ;;  %p275_p8 = scmp.lt.s32.totalorder %s1869_s30, 3 }
   0xc   : > { %p276_p9 = pnand %p1458_p7, %p275_p8 }
   0xd   : > { %v358_v0 = vld [vmem:[%s2609_s2] sm:$0xf] (!%p276_p9)  ;;  %vm408_vm0 = vcmask (!%p276_p9), 1043456   ;;  %s1460_s19 = sshll.u32 (!%p276_p9), %s1943_s9, 4  ;;  %v1871_v1 = vmov (!%p276_p9), 0.0   ;;  %p319_p11 = scmp.lt.s32.totalorder (!%p276_p9), %s1943_s9, 1 }
   0xe   : > { %279 = sbr.rel (%p276_p9) target bundleno = 1115 (0x45b), region = 52  ;;  %1541 = vmatprep.subr.msk.mxu0 (!%p276_p9), %vm408_vm0, %v358_v0  ;;  %p314_p10 = scmp.lt.s32.totalorder (!%p276_p9), %s1460_s19, 31  ;;  %1567 = vmatprep.subr.mxu1 (!%p276_p9), %v1871_v1  ;;  %v357_v2 = vld [vmem:[%s2612_s5] sm:$0xff] (!%p276_p9)  ;;  %vm1872_vm1 = vmmov (!%p276_p9), 0   ;;  %v1873_v3 = vmov (!%p276_p9), 0   ;;  %vm359_vm2 = vcmask (!%p276_p9), 31744  }
   0xf   : > { %1542 = vmatpush3.msk.msra.mxu0 (!%p276_p9), %vm408_vm0, %v358_v0  ;;  %1569 = vmatprep.mubr.msk.f32.mxu1 (!%p276_p9), %vm1872_vm1, %v1871_v1  ;;  %v557_v7 = vld [vmem:[%s2610_s3] sm:$0xff] (!%p276_p9)  ;;  %s310_s18 = sand.u32 (!%p276_p9), 1, %s1861_s28   ;;  %s1485_s20 = sshll.u32 (!%p276_p9), %s1943_s9, 6 }
  0x10   : > { %1735 = vset.pattern.permute.xlu0 (!%p276_p9), %v1873_v3  ;;  %1736 = vset.pattern.permute.xlu1 (!%p276_p9), %v1873_v3  ;;  %v2032_v22 = vld [vmem:[%s2611_s4] ss:$0 sm:$0xff] (!%p276_p9)  ;;  %s2565_s25 = scalar_lea.hbm (!%p276_p9), %s2615_s8, %s1485_s20 }
  0x11   : > { %706 = vperm.xlu0 (!%p276_p9), %1735, %v357_v2  }
  0x15   : > { %s2623_s19 = smov (!%p314_p10, %s1460_s19), 31 }
  0x16   : > { %s320_s22 = scalar_select %p319_p11, %s1943_s9, 1 }
  0x17   : > { %s1461_s23 = sshll.u32 %s2623_s19, 3  ;;  %s1459_s19 = sshll.u32 %s310_s18, 2 }
  0x18   : > { %s1985_s26 = scalar_lea.vmem %s2607_s0, %s1461_s23  ;;  %s1462_s10 = sshll.u32 %s320_s22, 2 }
  0x19   : > { %v323_v4 = vld [vmem:[%s1985_s26] sm:$0xff]  ;;  %v324_v5 = vld [vmem:[%s1985_s26 + $0x8] sm:$0xff]  ;;  %v325_v6 = vld [vmem:[%s1985_s26 + $0x10] sm:$0xff]  ;;  %s322_s17 = scalar_lea.vmem %s2608_s1, %s1462_s10  ;;  %s1874_s22 = smov 124  }
  0x1a   : > { %1543 = vmatprep.mubr.msk.f32.mxu0 %vm359_vm2, %v323_v4  ;;  %v339_v8 = vld [vmem:[%s322_s17] sm:$0xf]  ;;  %v326_v9 = vld [vmem:[%s1985_s26 + $0x18] sm:$0xff]  ;;  %v328_v11 = vld [vmem:[%s1985_s26 + $0x28] sm:$0xff]  ;;  %s312_s21 = scalar_lea.vmem [#allocation2], %s1459_s19  ;;  %s1876_s9 = smov [#allocation2]  }
  0x1b   : > { %1544 = vmatmul.mubr.msk.f32.vlgmr.msra.gmra.mrb[0].mxu0 %vm359_vm2, %v324_v5  ;;  %1568 = vmatpush3.msk.msra.mxu1 %vm408_vm0, %v339_v8  ;;  %v327_v10 = vld [vmem:[%s1985_s26 + $0x20] sm:$0xff]  ;;  %v329_v12 = vld [vmem:[%s1985_s26 + $0x30] sm:$0xff]  ;;  %v330_v13 = vld [vmem:[%s1985_s26 + $0x38] sm:$0xff]  ;;  %s1811_s12 = sshll.u32 %s1876_s9, 4  ;;  %s1812_s12 = int_to_ptr.vmem [resolvable:$false] %s1811_s12 }
  0x1c   : > { %1546 = vmatprep.mubr.msk.f32.mxu0 %vm359_vm2, %v325_v6  ;;  %1570 = vmatmul.mubr.msk.f32.vlgmr.msra.gmra.mrb[0].mxu1 %vm359_vm2, %v557_v7  ;;  %v331_v14 = vld [vmem:[%s1985_s26 + $0x40] sm:$0xff]  ;;  %v332_v15 = vld [vmem:[%s1985_s26 + $0x48] sm:$0xff]  ;;  %v333_v16 = vld [vmem:[%s1985_s26 + $0x50] sm:$0xff]  ;;  %s1813_s13 = scalar_lea.vmem %s1812_s12, 128 }
  0x1d   : > { %1604 = vmatprep.mubr.msk.f32.mxu1 %vm1872_vm1, %v1871_v1  ;;  %v334_v17 = vld [vmem:[%s1985_s26 + $0x58] sm:$0xff]  ;;  %v335_v18 = vld [vmem:[%s1985_s26 + $0x60] sm:$0xff]  ;;  %v336_v19 = vld [vmem:[%s1985_s26 + $0x68] sm:$0xff] }
  0x1e   : > { %v337_v20 = vld [vmem:[%s1985_s26 + $0x70] sm:$0xff]  ;;  %v338_v21 = vld [vmem:[%s1985_s26 + $0x78] sm:$0xff]  ;;  %s1371_s26 = scalar_lea.sflag [#allocation3], %s310_s18 }
  0x1f   : > { %1547 = vmatmul.mubr.msk.f32.gmra.mrb[2].mxu0 %vm359_vm2, %v326_v9 }
  0x20   : > { %1549 = vmatprep.mubr.msk.f32.mxu0 %vm359_vm2, %v327_v10 }
  0x23   : > { %1550 = vmatmul.mubr.msk.f32.gmra.mrb[4].mxu0 %vm359_vm2, %v328_v11 }
  0x24   : > { %1552 = vmatprep.mubr.msk.f32.mxu0 %vm359_vm2, %v329_v12 }
  0x27   : > { %1553 = vmatmul.mubr.msk.f32.gmra.mrb[6].mxu0 %vm359_vm2, %v330_v13 }
  0x28   : > { %1555 = vmatprep.mubr.msk.f32.mxu0 %vm359_vm2, %v331_v14 }
  0x2b   : > { %1556 = vmatmul.mubr.msk.f32.gmra.mrb[8].mxu0 %vm359_vm2, %v332_v15 }
  0x2c   : > { %1558 = vmatprep.mubr.msk.f32.mxu0 %vm359_vm2, %v333_v16 }
  0x2f   : > { %1559 = vmatmul.mubr.msk.f32.gmra.mrb[10].mxu0 %vm359_vm2, %v334_v17 }
  0x30   : > { %1561 = vmatprep.mubr.msk.f32.mxu0 %vm359_vm2, %v335_v18 }
  0x33   : > { %1562 = vmatmul.mubr.msk.f32.gmra.mrb[12].mxu0 %vm359_vm2, %v336_v19 }
  0x34   : > { %1564 = vmatprep.mubr.msk.f32.mxu0 %vm359_vm2, %v337_v20 }
  0x37   : > { %1565 = vmatmul.mubr.msk.f32.gmra.mrb[14].mxu0 %vm359_vm2, %v338_v21 }
  0x38   : > { %1639 = vmatprep.mubr.msk.f32.mxu0 %vm1872_vm1, %v1871_v1 }
  0x90   : > { %v707_v54 = vpop.permute.xlu0 %706 }
  0xee   : > { %v1545_v23 = vpop.f32.mrb[0].mxu0 }
  0xef   : > { %v641_v24 = vmul.f32 %v1545_v23, %v2032_v22  ;;  %v478_v25 = vpop.f32.mrb[1].mxu0  ;;  %v2036_v27 = vpop.f32.mrb[0].mxu1 }
  0xf0   : > { %v640_v26 = vmul.f32 %v2032_v22, %v478_v25  ;;  %v1571_v28 = vpop.f32.mrb[1].mxu1  ;;  %v2057_v55 = vmul.f32 %v707_v54, %v2036_v27 }
  0xf1   : > { %922 = vrot.lane.b32.xlu0 %v641_v24, %s1874_s22  ;;  %v659_v40 = vsel %vm359_vm2, %v641_v24, 0.0 }
  0xf2   : > { %v656_v29 = vsel %vm359_vm2, %v640_v26, 0.0  ;;  %v1548_v30 = vpop.f32.mrb[2].mxu0  ;;  %v710_v56 = vsel %vm408_vm0, %v2057_v55, 0.0 }
  0xf3   : > { %657 = vadd.xlane.f32.xlu1 %v656_v29  ;;  %v488_v31 = vpop.f32.mrb[3].mxu0  ;;  %v643_v36 = vmul.f32 %v1548_v30, %v2032_v22  ;;  %v711_v57 = vrot.slane %v710_v56, 4 }
  0xf4   : > { %v642_v37 = vmul.f32 %v2032_v22, %v488_v31  ;;  %v2104_v31 = vld [vmem:[%s2614_s7 + $0x8] sm:$0xff] }
  0xf5   : > { %920 = vrot.lane.b32.xlu0 %v640_v26, %s1874_s22  ;;  %v665_v41 = vsel %vm359_vm2, %v643_v36, 0.0  ;;  %v712_v58 = vadd.f32 %v711_v57, %v710_v56 }
  0xf6   : > { %v1551_v32 = vpop.f32.mrb[4].mxu0  ;;  %v662_v47 = vsel %vm359_vm2, %v642_v37, 0.0 }
  0xf7   : > { %v498_v33 = vpop.f32.mrb[5].mxu0  ;;  %v645_v49 = vmul.f32 %v1551_v32, %v2032_v22  ;;  %v713_v60 = vrot.slane %v712_v58, 2  ;;  %v2109_v32 = vld [vmem:[%s2614_s7 + $0x28] sm:$0xff] }
  0xf8   : > { %v644_v46 = vmul.f32 %v2032_v22, %v498_v33 }
  0xf9   : > { %v671_v51 = vsel %vm359_vm2, %v645_v49, 0.0  ;;  %v714_v61 = vadd.f32 %v713_v60, %v712_v58 }
  0xfa   : > { %v1554_v34 = vpop.f32.mrb[6].mxu0  ;;  %v668_v53 = vsel %vm359_vm2, %v644_v46, 0.0 }
  0xfb   : > { %v508_v35 = vpop.f32.mrb[7].mxu0  ;;  %v647_v59 = vmul.f32 %v1554_v34, %v2032_v22  ;;  %v715_v62 = vrot.slane %v714_v61, 1 }
  0xfc   : > { %v646_v52 = vmul.f32 %v2032_v22, %v508_v35 }
  0xfd   : > { %v2063_v63 = vadd.f32 %v715_v62, %v714_v61  ;;  %v677_v2 = vsel %vm359_vm2, %v647_v59, 0.0 }
  0xfe   : > { %v1557_v38 = vpop.f32.mrb[8].mxu0  ;;  %v674_v4 = vsel %vm359_vm2, %v646_v52, 0.0 }
  0xff   : > { %v518_v39 = vpop.f32.mrb[9].mxu0  ;;  %v649_v11 = vmul.f32 %v1557_v38, %v2032_v22 }
 0x100   : > { %v648_v3 = vmul.f32 %v2032_v22, %v518_v39 }
 0x101   : > { %v683_v21 = vsel %vm359_vm2, %v649_v11, 0.0 }
 0x102   : > { %v1560_v42 = vpop.f32.mrb[10].mxu0  ;;  %v680_v25 = vsel %vm359_vm2, %v648_v3, 0.0 }
 0x103   : > { %v528_v43 = vpop.f32.mrb[11].mxu0  ;;  %v651_v14 = vmul.f32 %v1560_v42, %v2032_v22 }
 0x104   : > { %926 = vrot.lane.b32.xlu1 %v643_v36, %s1874_s22  ;;  %v650_v6 = vmul.f32 %v2032_v22, %v528_v43 }
 0x105   : > { %v689_v54 = vsel %vm359_vm2, %v651_v14, 0.0 }
 0x106   : > { %v1563_v44 = vpop.f32.mrb[12].mxu0  ;;  %v686_v29 = vsel %vm359_vm2, %v650_v6, 0.0 }
 0x107   : > { %v538_v45 = vpop.f32.mrb[13].mxu0  ;;  %v653_v15 = vmul.f32 %v1563_v44, %v2032_v22 }
 0x108   : > { %924 = vrot.lane.b32.xlu1 %v642_v37, %s1874_s22  ;;  %v652_v7 = vmul.f32 %v2032_v22, %v538_v45 }
 0x10a   : > { %v1566_v48 = vpop.f32.mrb[14].mxu0  ;;  %v692_v34 = vsel %vm359_vm2, %v652_v7, 0.0 }
 0x10b   : > { %v548_v50 = vpop.f32.mrb[15].mxu0  ;;  %v655_v17 = vmul.f32 %v1566_v48, %v2032_v22  ;;  %v2130_v48 = vld [vmem:[%s2614_s7] sm:$0xff] }
 0x10c   : > { %v654_v23 = vmul.f32 %v2032_v22, %v548_v50  ;;  %v2136_v50 = vld [vmem:[%s2614_s7 + $0x20] sm:$0xff] }
 0x10d   : > { %v701_v60 = vsel %vm359_vm2, %v655_v17, 0.0 }
 0x10e   : > { %v698_v39 = vsel %vm359_vm2, %v654_v23, 0.0 }
 0x114   : > { %660 = vadd.xlane.f32.xlu0 %v659_v40 }
 0x118   : > { %666 = vadd.xlane.f32.xlu0 %v665_v41 }
 0x12c   : > { %663 = vadd.xlane.f32.xlu1 %v662_v47 }
 0x12e   : > { %928 = vrot.lane.b32.xlu0 %v644_v46, %s1874_s22 }
 0x13d   : > { %930 = vrot.lane.b32.xlu1 %v645_v49, %s1874_s22 }
 0x14d   : > { %672 = vadd.xlane.f32.xlu0 %v671_v51 }
 0x161   : > { %669 = vadd.xlane.f32.xlu1 %v668_v53 }
 0x163   : > { %932 = vrot.lane.b32.xlu0 %v646_v52, %s1874_s22  ;;  %v2071_v5 = vpop.permute.xlu0 %922 }
 0x164   : > { %v971_v61 = vsel %vm359_vm2, %v2071_v5, 0.0  ;;  %v2162_v5 = vld [vmem:[%s2614_s7 + $0x18] sm:$0xff] }
 0x167   : > { %v921_v8 = vpop.permute.xlu0 %920 }
 0x168   : > { %v968_v40 = vsel %vm359_vm2, %v921_v8, 0.0  ;;  %v2168_v8 = vld [vmem:[%s2614_s7 + $0x38] sm:$0xff] }
 0x172   : > { %934 = vrot.lane.b32.xlu1 %v647_v59, %s1874_s22  ;;  %v695_v59 = vsel %vm359_vm2, %v653_v15, 0.0 }
 0x180   : > { %v658_v0 = vpop.xlane.xlu1 %657 }
 0x181   : > { %v2066_v1 = vadd.f32 %v2063_v63, %v658_v0 }
 0x182   : > { %678 = vadd.xlane.f32.xlu0 %v677_v2 }
 0x183   : > { %v749_v43 = vmul.f32 0.2, %v2066_v1  ;;  %vm733_vm5 = vcmp.gt.f32.partialorder %v2066_v1, 0.0 }
 0x184   : > { %v2087_v16 = vpop.permute.xlu1 %926 }
 0x185   : > { %v765_v49 = vsel %vm733_vm5, %v2066_v1, %v749_v43  ;;  %v977_v62 = vsel %vm359_vm2, %v2087_v16, 0.0 }
 0x186   : > { %v2141_v56 = vadd.f32 %v765_v49, %v2130_v48 }
 0x188   : > { %v925_v18 = vpop.permute.xlu1 %924 }
 0x189   : > { %v974_v42 = vsel %vm359_vm2, %v925_v18, 0.0 }
 0x196   : > { %675 = vadd.xlane.f32.xlu1 %v674_v4 }
 0x198   : > { %936 = vrot.lane.b32.xlu0 %v648_v3, %s1874_s22 }
 0x19c   : > { %940 = vrot.lane.b32.xlu0 %v650_v6, %s1874_s22 }
 0x1a0   : > { %944 = vrot.lane.b32.xlu0 %v652_v7, %s1874_s22 }
 0x1a1   : > { %v661_v9 = vpop.xlane.xlu0 %660 }
 0x1a2   : > { %v718_v10 = vadd.f32 %v2063_v63, %v661_v9 }
 0x1a4   : > { %v750_v26 = vmul.f32 0.2, %v718_v10  ;;  %vm734_vm3 = vcmp.gt.f32.partialorder %v718_v10, 0.0 }
 0x1a5   : > { %v667_v12 = vpop.xlane.xlu0 %666 }
 0x1a6   : > { %v2081_v13 = vadd.f32 %v2063_v63, %v667_v12  ;;  %v766_v22 = vsel %vm734_vm3, %v718_v10, %v750_v26 }
 0x1a7   : > { %938 = vrot.lane.b32.xlu1 %v649_v11, %s1874_s22  ;;  %v2113_v36 = vadd.f32 %v766_v22, %v2104_v31 }
 0x1a8   : > { %v752_v3 = vmul.f32 0.2, %v2081_v13  ;;  %vm736_vm7 = vcmp.gt.f32.partialorder %v2081_v13, 0.0 }
 0x1a9   : > { %v929_v24 = vpop.permute.xlu0 %928 }
 0x1aa   : > { %v980_v45 = vsel %vm359_vm2, %v929_v24, 0.0  ;;  %v768_v7 = vsel %vm736_vm7, %v2081_v13, %v752_v3 }
 0x1ab   : > { %942 = vrot.lane.b32.xlu1 %v651_v14, %s1874_s22  ;;  %v2172_v14 = vadd.f32 %v768_v7, %v2162_v5 }
 0x1af   : > { %946 = vrot.lane.b32.xlu1 %v653_v15, %s1874_s22 }
 0x1b3   : > { %950 = vrot.lane.b32.xlu1 %v655_v17, %s1874_s22 }
 0x1b9   : > { %v664_v19 = vpop.xlane.xlu1 %663 }
 0x1ba   : > { %v2093_v20 = vadd.f32 %v2063_v63, %v664_v19 }
 0x1bc   : > { %vm735_vm9 = vcmp.gt.f32.partialorder %v2093_v20, 0.0 }
 0x1bd   : > { %v931_v41 = vpop.permute.xlu1 %930 }
 0x1be   : > { %v983_v0 = vsel %vm359_vm2, %v931_v41, 0.0 }
 0x1bf   : > { %684 = vadd.xlane.f32.xlu0 %v683_v21  ;;  %v751_v21 = vmul.f32 0.2, %v2093_v20 }
 0x1c1   : > { %v767_v26 = vsel %vm735_vm9, %v2093_v20, %v751_v21 }
 0x1d5   : > { %948 = vrot.lane.b32.xlu0 %v654_v23, %s1874_s22  ;;  %s1384_s22 = sshll.u32 %s312_s21, 4  ;;  %s2567_s22 = int_to_ptr.vmem [resolvable:$true] %s1384_s22 }
 0x1d6   : > { %s1807_s10 = scalar_lea.vmem %s2567_s22, 64  ;;  %p1814_p1 = scmp.lt.s32.totalorder %s2567_s22, %s1812_s12 }
 0x1d7   : > { %681 = vadd.xlane.f32.xlu1 %v680_v25  ;;  %v2187_v25 = vld [vmem:[%s2614_s7 + $0x10] sm:$0xff]  ;;  %p1808_p12 = scmp.ne.s32.totalorder %s2567_s22, %s1807_s10  ;;  %p1815_p2 = scmp.lt.s32.totalorder %s1813_s13, %s1807_s10 }
 0x1d9   : > { %p1809_p13 = pnand %p1808_p12, %p1960_p5  ;;  %p1816_p3 = por %p1815_p2, %p1814_p1 }
 0x1da   : > { %v673_v28 = vpop.xlane.xlu0 %672 }
 0x1db   : > { %v722_v30 = vadd.f32 %v2063_v63, %v673_v28  ;;  %687 = vadd.xlane.f32.xlu1 %v686_v29  ;;  %v2193_v28 = vld [vmem:[%s2614_s7 + $0x30] sm:$0xff]  ;;  %p1810_p0 = pneg %p1809_p13 }
 0x1dd   : > { %vm738_vm4 = vcmp.gt.f32.partialorder %v722_v30, 0.0  ;;  %v754_v33 = vmul.f32 0.2, %v722_v30  ;;  %p1817_p4 = pnand %p1816_p3, %p1810_p0 }
 0x1de   : > { %v933_v46 = vpop.permute.xlu0 %932 }
 0x1df   : > { %v770_v35 = vsel %vm738_vm4, %v722_v30, %v754_v33  ;;  %693 = vadd.xlane.f32.xlu1 %v692_v34  ;;  %v986_v52 = vsel %vm359_vm2, %v933_v46, 0.0  ;;  %v2197_v34 = vadd.f32 %v767_v26, %v2187_v25 }
 0x1e0   : > { %v2116_v37 = vadd.f32 %v770_v35, %v2109_v32 }
 0x1e2   : > { %v798_v38 = vmax.f32 %v2113_v36, %v2116_v37 }
 0x1e3   : > { %699 = vadd.xlane.f32.xlu1 %v698_v39 }
 0x1e7   : > { %969 = vadd.xlane.f32.xlu1 %v968_v40 }
 0x1eb   : > { %975 = vadd.xlane.f32.xlu1 %v974_v42 }
 0x1ee   : > { %v670_v44 = vpop.xlane.xlu1 %669 }
 0x1ef   : > { %v721_v47 = vadd.f32 %v2063_v63, %v670_v44  ;;  %981 = vadd.xlane.f32.xlu1 %v980_v45 }
 0x1f1   : > { %vm737_vm6 = vcmp.gt.f32.partialorder %v721_v47, 0.0  ;;  %v753_v51 = vmul.f32 0.2, %v721_v47 }
 0x1f2   : > { %v935_v1 = vpop.permute.xlu1 %934 }
 0x1f3   : > { %v769_v53 = vsel %vm737_vm6, %v721_v47, %v753_v51  ;;  %987 = vadd.xlane.f32.xlu1 %v986_v52  ;;  %v989_v2 = vsel %vm359_vm2, %v935_v1, 0.0  ;;  %v2211_v47 = vld [vmem:[%s2614_s7 + $0x48] sm:$0xff] }
 0x1f4   : > { %v2144_v57 = vadd.f32 %v769_v53, %v2136_v50  ;;  %690 = vadd.xlane.f32.xlu0 %v689_v54 }
 0x1f6   : > { %v797_v58 = vmax.f32 %v2141_v56, %v2144_v57 }
 0x1f8   : > { %696 = vadd.xlane.f32.xlu0 %v695_v59 }
 0x1fc   : > { %702 = vadd.xlane.f32.xlu0 %v701_v60 }
 0x200   : > { %972 = vadd.xlane.f32.xlu0 %v971_v61 }
 0x204   : > { %978 = vadd.xlane.f32.xlu0 %v977_v62  ;;  %v2225_v62 = vld [vmem:[%s2614_s7 + $0x40] sm:$0xff] }
 0x208   : > { %984 = vadd.xlane.f32.xlu0 %v983_v0 }
 0x20c   : > { %990 = vadd.xlane.f32.xlu0 %v989_v2 }
 0x20f   : > { %v679_v4 = vpop.xlane.xlu0 %678 }
 0x210   : > { %v724_v6 = vadd.f32 %v2063_v63, %v679_v4 }
 0x212   : > { %vm740_vm8 = vcmp.gt.f32.partialorder %v724_v6, 0.0  ;;  %v756_v9 = vmul.f32 0.2, %v724_v6 }
 0x213   : > { %v937_v10 = vpop.permute.xlu0 %936 }
 0x214   : > { %v772_v11 = vsel %vm740_vm8, %v724_v6, %v756_v9  ;;  %v992_v12 = vsel %vm359_vm2, %v937_v10, 0.0 }
 0x215   : > { %v2175_v15 = vadd.f32 %v772_v11, %v2168_v8  ;;  %993 = vadd.xlane.f32.xlu1 %v992_v12 }
 0x217   : > { %v800_v13 = vmax.f32 %v2172_v14, %v2175_v15  ;;  %v941_v16 = vpop.permute.xlu0 %940 }
 0x218   : > { %v998_v17 = vsel %vm359_vm2, %v941_v16, 0.0  ;;  %v2247_v16 = vld [vmem:[%s2614_s7 + $0x60] sm:$0xff] }
 0x219   : > { %999 = vadd.xlane.f32.xlu1 %v998_v17 }
 0x21b   : > { %v945_v18 = vpop.permute.xlu0 %944 }
 0x21c   : > { %v1004_v19 = vsel %vm359_vm2, %v945_v18, 0.0 }
 0x21d   : > { %1005 = vadd.xlane.f32.xlu1 %v1004_v19 }
 0x223   : > { %v676_v23 = vpop.xlane.xlu1 %675 }
 0x224   : > { %v723_v24 = vadd.f32 %v2063_v63, %v676_v23 }
 0x226   : > { %vm739_vm10 = vcmp.gt.f32.partialorder %v723_v24, 0.0  ;;  %v755_v29 = vmul.f32 0.2, %v723_v24 }
 0x227   : > { %v939_v30 = vpop.permute.xlu1 %938 }
 0x228   : > { %v771_v22 = vsel %vm739_vm10, %v723_v24, %v755_v29  ;;  %v995_v33 = vsel %vm359_vm2, %v939_v30, 0.0  ;;  %v2257_v24 = vld [vmem:[%s2614_s7 + $0x70] sm:$0xff] }
 0x229   : > { %v2200_v35 = vadd.f32 %v771_v22, %v2193_v28  ;;  %996 = vadd.xlane.f32.xlu0 %v995_v33 }
 0x22b   : > { %v799_v20 = vmax.f32 %v2197_v34, %v2200_v35  ;;  %v943_v39 = vpop.permute.xlu1 %942 }
 0x22c   : > { %v1001_v40 = vsel %vm359_vm2, %v943_v39, 0.0 }
 0x22d   : > { %1002 = vadd.xlane.f32.xlu0 %v1001_v40 }
 0x22f   : > { %v947_v41 = vpop.permute.xlu1 %946 }
 0x230   : > { %v1007_v42 = vsel %vm359_vm2, %v947_v41, 0.0  ;;  %v2270_v41 = vld [vmem:[%s2614_s7 + $0x58] sm:$0xff] }
 0x231   : > { %1008 = vadd.xlane.f32.xlu0 %v1007_v42 }
 0x233   : > { %v951_v43 = vpop.permute.xlu1 %950 }
 0x234   : > { %v1013_v44 = vsel %vm359_vm2, %v951_v43, 0.0  ;;  %v1017_v43 = vrot.slane %v2057_v55, 4 }
 0x235   : > { %1014 = vadd.xlane.f32.xlu0 %v1013_v44 }
 0x24c   : > { %v685_v45 = vpop.xlane.xlu0 %684 }
 0x24d   : > { %v726_v46 = vadd.f32 %v2063_v63, %v685_v45 }
 0x24f   : > { %vm742_vm11 = vcmp.gt.f32.partialorder %v726_v46, 0.0  ;;  %v758_v49 = vmul.f32 0.2, %v726_v46 }
 0x250   : > { %v949_v51 = vpop.permute.xlu0 %948 }
 0x251   : > { %v774_v52 = vsel %vm742_vm11, %v726_v46, %v758_v49  ;;  %v1010_v53 = vsel %vm359_vm2, %v949_v51, 0.0  ;;  %v2280_v51 = vld [vmem:[%s2614_s7 + $0x68] sm:$0xff] }
 0x252   : > { %v2215_v54 = vadd.f32 %v774_v52, %v2211_v47  ;;  %1011 = vadd.xlane.f32.xlu1 %v1010_v53  ;;  %v1019_v53 = vsel %vm408_vm0, %v1017_v43, 0.0 }
 0x254   : > { %v802_v59 = vmax.f32 %v798_v38, %v2215_v54  ;;  %v2234_v38 = vld [vmem:[%s2614_s7 + $0x50] sm:$0xff] }
 0x264   : > { %v682_v60 = vpop.xlane.xlu1 %681 }
 0x265   : > { %v725_v61 = vadd.f32 %v2063_v63, %v682_v60 }
 0x267   : > { %vm741_vm12 = vcmp.gt.f32.partialorder %v725_v61, 0.0  ;;  %v757_v0 = vmul.f32 0.2, %v725_v61 }
 0x268   : > { %v688_v1 = vpop.xlane.xlu1 %687 }
 0x269   : > { %v773_v2 = vsel %vm741_vm12, %v725_v61, %v757_v0  ;;  %v727_v3 = vadd.f32 %v2063_v63, %v688_v1 }
 0x26a   : > { %v2229_v4 = vadd.f32 %v773_v2, %v2225_v62  ;;  %v1020_v2 = vrot.slane %v1019_v53, 4 }
 0x26b   : > { %vm743_vm13 = vcmp.gt.f32.partialorder %v727_v3, 0.0  ;;  %v759_v6 = vmul.f32 0.2, %v727_v3 }
 0x26c   : > { %v801_v7 = vmax.f32 %v797_v58, %v2229_v4  ;;  %v694_v9 = vpop.xlane.xlu1 %693 }
 0x26d   : > { %v775_v10 = vsel %vm743_vm13, %v727_v3, %v759_v6  ;;  %v729_v11 = vadd.f32 %v2063_v63, %v694_v9  ;;  %v2294_v3 = vld [vmem:[%s2614_s7 + $0x78] sm:$0xff] }
 0x26e   : > { %v2242_v12 = vadd.f32 %v775_v10, %v2234_v38 }
 0x26f   : > { %vm745_vm14 = vcmp.gt.f32.partialorder %v729_v11, 0.0  ;;  %v761_v17 = vmul.f32 0.2, %v729_v11 }
 0x270   : > { %v803_v18 = vmax.f32 %v799_v20, %v2242_v12  ;;  %v700_v19 = vpop.xlane.xlu1 %699  ;;  %v1875_v20 = vmov 0.0|0.0  }
 0x271   : > { %v777_v21 = vsel %vm745_vm14, %v729_v11, %v761_v17  ;;  %v731_v58 = vadd.f32 %v2063_v63, %v700_v19  ;;  %1666 = vmatprep.subr.bf16.mxu0 %v1875_v20  ;;  %1642 = vmatprep.subr.bf16.mxu1 %v1875_v20  ;;  %v1021_v11 = vadd.f32 %v1020_v2, %v1019_v53 }
 0x272   : > { %v2252_v23 = vadd.f32 %v777_v21, %v2247_v16 }
 0x273   : > { %vm747_vm15 = vcmp.gt.f32.partialorder %v731_v58, 0.0  ;;  %v763_v26 = vmul.f32 0.2, %v731_v58  ;;  %v1022_v19 = vrot.slane %v1021_v11, 2 }
 0x274   : > { %v805_v29 = vmax.f32 %v801_v7, %v2252_v23  ;;  %v970_v17 = vpop.xlane.xlu1 %969 }
 0x275   : > { %v779_v30 = vsel %vm747_vm15, %v731_v58, %v763_v26  ;;  %v1023_v26 = vadd.f32 %v1022_v19, %v1021_v11 }
 0x276   : > { %v2261_v22 = vadd.f32 %v779_v30, %v2257_v24 }
 0x278   : > { %v807_v33 = vmax.f32 %v803_v18, %v2261_v22  ;;  %v2301_v30 = vpop.xlane.xlu1 %975 }
 0x281   : > { %v691_v39 = vpop.xlane.xlu0 %690 }
 0x282   : > { %v728_v40 = vadd.f32 %v2063_v63, %v691_v39 }
 0x284   : > { %vm744_vm1 = vcmp.gt.f32.partialorder %v728_v40, 0.0  ;;  %v760_v42 = vmul.f32 0.2, %v728_v40 }
 0x285   : > { %v697_v44 = vpop.xlane.xlu0 %696 }
 0x286   : > { %v776_v45 = vsel %vm744_vm1, %v728_v40, %v760_v42  ;;  %v730_v46 = vadd.f32 %v2063_v63, %v697_v44 }
 0x287   : > { %v2275_v49 = vadd.f32 %v776_v45, %v2270_v41 }
 0x288   : > { %vm746_vm2 = vcmp.gt.f32.partialorder %v730_v46, 0.0  ;;  %v762_v52 = vmul.f32 0.2, %v730_v46 }
 0x289   : > { %v804_v55 = vmax.f32 %v800_v13, %v2275_v49  ;;  %v703_v60 = vpop.xlane.xlu0 %702 }
 0x28a   : > { %v778_v61 = vsel %vm746_vm2, %v730_v46, %v762_v52  ;;  %v732_v0 = vadd.f32 %v2063_v63, %v703_v60 }
 0x28b   : > { %v2289_v1 = vadd.f32 %v778_v61, %v2280_v51 }
 0x28c   : > { %vm748_vm3 = vcmp.gt.f32.partialorder %v732_v0, 0.0  ;;  %v764_v6 = vmul.f32 0.2, %v732_v0 }
 0x28d   : > { %v806_v7 = vmax.f32 %v802_v59, %v2289_v1  ;;  %v973_v40 = vpop.xlane.xlu0 %972  ;;  %v1024_v59 = vrot.slane %v1023_v26, 1 }
 0x28e   : > { %v780_v9 = vsel %vm748_vm3, %v732_v0, %v764_v6 }
 0x28f   : > { %v809_v10 = vmax.f32 %v805_v29, %v806_v7  ;;  %v2298_v13 = vadd.f32 %v780_v9, %v2294_v3  ;;  %v982_v29 = vpop.xlane.xlu1 %981  ;;  %v2303_v45 = vadd.f32 %v1024_v59, %v1023_v26 }
 0x291   : > { %v808_v63 = vmax.f32 %v804_v55, %v2298_v13  ;;  %v979_v46 = vpop.xlane.xlu0 %978  ;;  %v1027_v26 = vadd.f32 %v2303_v45, %v973_v40 }
 0x293   : > { %v810_v18 = vmax.f32 %v807_v33, %v808_v63  ;;  %v1030_v33 = vadd.f32 %v2303_v45, %v982_v29  ;;  %v2316_v0 = vpop.xlane.xlu1 %987  ;;  %vm1043_vm5 = vcmp.gt.f32.partialorder %v1027_v26, 0.0 }
 0x295   : > { %v811_v21 = vmax.f32 %v809_v10, %v810_v18  ;;  %v985_v9 = vpop.xlane.xlu0 %984  ;;  %v1062_v19 = vmul.f32 0.2, %v1030_v33  ;;  %vm1046_vm0 = vcmp.gt.f32.partialorder %v1030_v33, 0.0 }
 0x297   : > { %v812_v58 = vrot.slane %v811_v21, 4  ;;  %v1078_v59 = vsel %vm1046_vm0, %v1030_v33, %v1062_v19 }
 0x298   : > { %v2350_v40 = vadd.f32 %v1078_v59, %v2136_v50 }
 0x299   : > { %v813_v39 = vmax.f32 %v811_v21, %v812_v58 }
 0x29b   : > { %v814_v42 = vrot.slane %v813_v39, 2 }
 0x29d   : > { %v815_v43 = vmax.f32 %v813_v39, %v814_v42  ;;  %v991_v42 = vpop.xlane.xlu0 %990 }
 0x29f   : > { %v816_v44 = vrot.slane %v815_v43, 1 }
 0x2a1   : > { %v2305_v52 = vmax.f32 %v815_v43, %v816_v44 }
 0x2a2   : > { %v994_v18 = vpop.xlane.xlu1 %993 }
 0x2a3   : > { %v818_v53 = vsub.f32 %v2141_v56, %v2305_v52  ;;  %v819_v55 = vsub.f32 %v2113_v36, %v2305_v52  ;;  %v820_v60 = vsub.f32 %v2197_v34, %v2305_v52  ;;  %v821_v61 = vsub.f32 %v2172_v14, %v2305_v52 }
 0x2a4   : > { %v822_v2 = vsub.f32 %v2144_v57, %v2305_v52  ;;  %v823_v6 = vsub.f32 %v2116_v37, %v2305_v52  ;;  %v824_v56 = vsub.f32 %v2200_v35, %v2305_v52  ;;  %v825_v36 = vsub.f32 %v2175_v15, %v2305_v52 }
 0x2a5   : > { %v826_v34 = vsub.f32 %v2229_v4, %v2305_v52  ;;  %v827_v14 = vsub.f32 %v2215_v54, %v2305_v52  ;;  %v828_v7 = vsub.f32 %v2242_v12, %v2305_v52  ;;  %v829_v57 = vsub.f32 %v2275_v49, %v2305_v52 }
 0x2a6   : > { %v830_v37 = vsub.f32 %v2252_v23, %v2305_v52  ;;  %v831_v35 = vsub.f32 %v2289_v1, %v2305_v52  ;;  %v832_v15 = vsub.f32 %v2261_v22, %v2305_v52  ;;  %v833_v4 = vsub.f32 %v2298_v13, %v2305_v52  ;;  %v2345_v29 = vpop.xlane.xlu1 %999 }
 0x2a7   : > { %v1026_v54 = vadd.f32 %v2303_v45, %v970_v17  ;;  %v834_v10 = vmul.f32 1.442695, %v818_v53  ;;  %v836_v11 = vmul.f32 1.442695, %v819_v55  ;;  %v838_v63 = vmul.f32 1.442695, %v820_v60 }
 0x2a8   : > { %v840_v21 = vmul.f32 1.442695, %v821_v61  ;;  %v842_v39 = vmul.f32 1.442695, %v822_v2  ;;  %v844_v43 = vmul.f32 1.442695, %v823_v6  ;;  %v1029_v17 = vadd.f32 %v2303_v45, %v979_v46 }
 0x2a9   : > { %1737 = vpow2.f32 %v834_v10  ;;  %v1058_v58 = vmul.f32 0.2, %v1026_v54  ;;  %vm1042_vm4 = vcmp.gt.f32.partialorder %v1026_v54, 0.0  ;;  %v1059_v53 = vmul.f32 0.2, %v1027_v26 }
 0x2aa   : > { %1739 = vpow2.f32 %v836_v11  ;;  %v1031_v55 = vadd.f32 %v2303_v45, %v985_v9  ;;  %v1033_v60 = vadd.f32 %v2303_v45, %v991_v42  ;;  %v846_v61 = vmul.f32 1.442695, %v824_v56 }
 0x2ab   : > { %1741 = vpow2.f32 %v838_v63  ;;  %v1074_v44 = vsel %vm1042_vm4, %v1026_v54, %v1058_v58  ;;  %v848_v2 = vmul.f32 1.442695, %v825_v36  ;;  %v1061_v46 = vmul.f32 0.2, %v1029_v17  ;;  %v1006_v63 = vpop.xlane.xlu1 %1005 }
 0x2ac   : > { %1743 = vpow2.f32 %v840_v21  ;;  %v2353_v33 = vadd.f32 %v1074_v44, %v2130_v48  ;;  %v1075_v54 = vsel %vm1043_vm5, %v1027_v26, %v1059_v53  ;;  %vm1045_vm6 = vcmp.gt.f32.partialorder %v1029_v17, 0.0 }
 0x2ad   : > { %1745 = vpow2.f32 %v842_v39  ;;  %v1063_v10 = vmul.f32 0.2, %v1031_v55  ;;  %v1065_v9 = vmul.f32 0.2, %v1033_v60  ;;  %v850_v56 = vmul.f32 1.442695, %v826_v34 }
 0x2ae   : > { %1747 = vpow2.f32 %v844_v43  ;;  %vm1049_vm7 = vcmp.gt.f32.partialorder %v1033_v60, 0.0  ;;  %v1034_v50 = vadd.f32 %v2303_v45, %v994_v18  ;;  %v1106_v48 = vmax.f32 %v2353_v33, %v2350_v40 }
 0x2af   : > { %1749 = vpow2.f32 %v846_v61  ;;  %vm1047_vm8 = vcmp.gt.f32.partialorder %v1031_v55, 0.0  ;;  %v852_v21 = vmul.f32 1.442695, %v827_v14  ;;  %v2367_v58 = vadd.f32 %v1075_v54, %v2104_v31 }
 0x2b0   : > { %1751 = vpow2.f32 %v848_v2  ;;  %v1077_v34 = vsel %vm1045_vm6, %v1029_v17, %v1061_v46  ;;  %v1081_v39 = vsel %vm1049_vm7, %v1033_v60, %v1065_v9  ;;  %v1038_v42 = vadd.f32 %v2303_v45, %v1006_v63 }
 0x2b1   : > { %1753 = vpow2.f32 %v850_v56  ;;  %v854_v14 = vmul.f32 1.442695, %v828_v7  ;;  %v1079_v44 = vsel %vm1047_vm8, %v1031_v55, %v1063_v10  ;;  %v1066_v31 = vmul.f32 0.2, %v1034_v50 }
 0x2b2   : > { %v2380_v17 = vadd.f32 %v1077_v34, %v2162_v5  ;;  %vm1050_vm9 = vcmp.gt.f32.partialorder %v1034_v50, 0.0  ;;  %1755 = vpow2.f32 %v852_v21  ;;  %v856_v2 = vmul.f32 1.442695, %v829_v57 }
 0x2b3   : > { %v2355_v6 = vpop.eup %1737  ;;  %v2388_v46 = vadd.f32 %v1081_v39, %v2168_v8  ;;  %v2392_v55 = vadd.f32 %v1079_v44, %v2109_v32  ;;  %v1070_v5 = vmul.f32 0.2, %v1038_v42  ;;  %1757 = vpow2.f32 %v854_v14 }
 0x2b4   : > { %v2357_v11 = vpop.eup %1739  ;;  %v858_v49 = vmul.f32 1.442695, %v830_v37  ;;  %v1082_v57 = vsel %vm1050_vm9, %v1034_v50, %v1066_v31  ;;  %vm1054_vm11 = vcmp.gt.f32.partialorder %v1038_v42, 0.0  ;;  %1759 = vpow2.f32 %v856_v2 }
 0x2b5   : > { %v866_v36 = vadd.f32 %v2357_v11, %v2355_v6  ;;  %v2364_v19 = vpop.eup %1741  ;;  %v860_v32 = vmul.f32 1.442695, %v831_v35  ;;  %v1109_v23 = vmax.f32 %v2380_v17, %v2388_v46  ;;  %v1086_v21 = vsel %vm1054_vm11, %v1038_v42, %v1070_v5 }
 0x2b6   : > { %v997_v26 = vpop.xlane.xlu0 %996  ;;  %v2373_v43 = vpop.eup %1743  ;;  %1761 = vpow2.f32 %v858_v49  ;;  %v2416_v1 = vadd.f32 %v1082_v57, %v2225_v62  ;;  %v1107_v39 = vmax.f32 %v2367_v58, %v2392_v55  ;;  %v864_v62 = vmul.f32 1.442695, %v833_v4 }
 0x2b7   : > { %v867_v18 = vadd.f32 %v2364_v19, %v866_v36  ;;  %v1035_v59 = vadd.f32 %v2303_v45, %v997_v26  ;;  %v2382_v61 = vpop.eup %1745  ;;  %v862_v36 = vmul.f32 1.442695, %v832_v15  ;;  %1763 = vpow2.f32 %v860_v32 }
 0x2b8   : > { %v2395_v10 = vpop.eup %1747  ;;  %v1110_v13 = vmax.f32 %v1106_v48, %v2416_v1 }
 0x2b9   : > { %v868_v53 = vadd.f32 %v2373_v43, %v867_v18  ;;  %v1067_v60 = vmul.f32 0.2, %v1035_v59  ;;  %vm1051_vm10 = vcmp.gt.f32.partialorder %v1035_v59, 0.0  ;;  %v2401_v63 = vpop.eup %1749  ;;  %1765 = vpow2.f32 %v862_v36 }
 0x2ba   : > { %v1003_v12 = vpop.xlane.xlu0 %1002  ;;  %v2413_v18 = vpop.eup %1751  ;;  %1767 = vpow2.f32 %v864_v62 }
 0x2bb   : > { %v869_v7 = vadd.f32 %v2382_v61, %v868_v53  ;;  %v1037_v54 = vadd.f32 %v2303_v45, %v1003_v12  ;;  %v1083_v9 = vsel %vm1051_vm10, %v1035_v59, %v1067_v60  ;;  %v2427_v59 = vpop.eup %1753 }
 0x2bc   : > { %v2419_v35 = vadd.f32 %v1083_v9, %v2211_v47  ;;  %v2433_v47 = vadd.f32 %v1086_v21, %v2247_v16  ;;  %v2440_v60 = vpop.eup %1755 }
 0x2bd   : > { %v870_v8 = vadd.f32 %v2395_v10, %v869_v7  ;;  %vm1053_vm12 = vcmp.gt.f32.partialorder %v1037_v54, 0.0  ;;  %v1069_v56 = vmul.f32 0.2, %v1037_v54  ;;  %v2451_v12 = vpop.eup %1757 }
 0x2be   : > { %v1009_v37 = vpop.xlane.xlu0 %1008  ;;  %v1111_v16 = vmax.f32 %v1107_v39, %v2419_v35  ;;  %v1114_v7 = vmax.f32 %v1110_v13, %v2433_v47  ;;  %v2456_v48 = vpop.eup %1759  ;;  %v1028_v39 = vadd.f32 %v2303_v45, %v2301_v30 }
 0x2bf   : > { %v871_v50 = vadd.f32 %v2401_v63, %v870_v8  ;;  %v1085_v34 = vsel %vm1053_vm12, %v1037_v54, %v1069_v56  ;;  %v1039_v26 = vadd.f32 %v2303_v45, %v1009_v37 }
 0x2c0   : > { %v2422_v22 = vadd.f32 %v1085_v34, %v2270_v41  ;;  %v2462_v9 = vpop.eup %1761  ;;  %vm1044_vm1 = vcmp.gt.f32.partialorder %v1028_v39, 0.0 }
 0x2c1   : > { %v872_v15 = vadd.f32 %v2413_v18, %v871_v50  ;;  %vm1055_vm13 = vcmp.gt.f32.partialorder %v1039_v26, 0.0  ;;  %v1071_v42 = vmul.f32 0.2, %v1039_v26  ;;  %v1764_v36 = vpop.eup %1763 }
 0x2c2   : > { %v2436_v41 = vmax.f32 %v1109_v23, %v2422_v22  ;;  %v1015_v14 = vpop.xlane.xlu0 %1014 }
 0x2c3   : > { %v873_v44 = vadd.f32 %v2427_v59, %v872_v15  ;;  %v1087_v31 = vsel %vm1055_vm13, %v1039_v26, %v1071_v42  ;;  %v1041_v53 = vadd.f32 %v2303_v45, %v1015_v14  ;;  %v2467_v37 = vpop.eup %1765  ;;  %v1036_v42 = vadd.f32 %v2303_v45, %v2345_v29 }
 0x2c4   : > { %v2448_v52 = vadd.f32 %v1087_v31, %v2280_v51  ;;  %v1768_v21 = vpop.eup %1767 }
 0x2c5   : > { %v874_v4 = vadd.f32 %v2440_v60, %v873_v44  ;;  %vm1057_vm14 = vcmp.gt.f32.partialorder %v1041_v53, 0.0  ;;  %v1073_v2 = vmul.f32 0.2, %v1041_v53  ;;  %v1060_v44 = vmul.f32 0.2, %v1028_v39 }
 0x2c6   : > { %v1115_v5 = vmax.f32 %v1111_v16, %v2448_v52  ;;  %v1068_v31 = vmul.f32 0.2, %v1036_v42  ;;  %vm1052_vm2 = vcmp.gt.f32.partialorder %v1036_v42, 0.0 }
 0x2c7   : > { %v875_v54 = vadd.f32 %v2451_v12, %v874_v4  ;;  %v1089_v49 = vsel %vm1057_vm14, %v1041_v53, %v1073_v2  ;;  %v1076_v4 = vsel %vm1044_vm1, %v1028_v39, %v1060_v44 }
 0x2c8   : > { %v1118_v57 = vmax.f32 %v1114_v7, %v1115_v5  ;;  %v2459_v51 = vadd.f32 %v1089_v49, %v2294_v3  ;;  %v1032_v3 = vadd.f32 %v2303_v45, %v2316_v0  ;;  %v1084_v0 = vsel %vm1052_vm2, %v1036_v42, %v1068_v31 }
 0x2c9   : > { %v876_v8 = vadd.f32 %v2456_v48, %v875_v54  ;;  %v2481_v7 = vadd.f32 %v1076_v4, %v2187_v25  ;;  %v2484_v5 = vadd.f32 %v1084_v0, %v2234_v38 }
 0x2ca   : > { %v1117_v56 = vmax.f32 %v2436_v41, %v2459_v51  ;;  %v1064_v41 = vmul.f32 0.2, %v1032_v3  ;;  %vm1048_vm15 = vcmp.gt.f32.partialorder %v1032_v3, 0.0 }
 0x2cb   : > { %v877_v32 = vadd.f32 %v2462_v9, %v876_v8 }
 0x2cc   : > { %v1080_v13 = vsel %vm1048_vm15, %v1032_v3, %v1064_v41 }
 0x2cd   : > { %v878_v23 = vadd.f32 %v1764_v36, %v877_v32  ;;  %v2477_v2 = vadd.f32 %v1080_v13, %v2193_v28  ;;  %v1357_v28 = vld [vmem:[%s2613_s6] sm:$0xf] }
 0x2ce   : > { %1360 = vperm.xlu1 %1736, %v1357_v28  }
 0x2cf   : > { %v879_v50 = vadd.f32 %v2467_v37, %v878_v23  ;;  %v1108_v49 = vmax.f32 %v2481_v7, %v2477_v2 }
 0x2d1   : > { %v880_v34 = vadd.f32 %v1768_v21, %v879_v50  ;;  %v1112_v32 = vmax.f32 %v1108_v49, %v2484_v5 }
 0x2d3   : > { %v881_v26 = vrot.slane %v880_v34, 4 }
 0x2d5   : > { %v882_v15 = vadd.f32 %v881_v26, %v880_v34 }
 0x2d7   : > { %v883_v62 = vrot.slane %v882_v15, 2 }
 0x2d9   : > { %v884_v14 = vadd.f32 %v883_v62, %v882_v15 }
 0x2db   : > { %v885_v53 = vrot.slane %v884_v14, 1 }
 0x2dd   : > { %v886_v16 = vadd.f32 %v885_v53, %v884_v14 }
 0x2df   : > { %1769 = vrcp.f32 %v886_v16  ;;  %v1012_v30 = vpop.xlane.xlu1 %1011 }
 0x2e0   : > { %v1040_v29 = vadd.f32 %v2303_v45, %v1012_v30 }
 0x2e2   : > { %vm1056_vm3 = vcmp.gt.f32.partialorder %v1040_v29, 0.0  ;;  %v1072_v54 = vmul.f32 0.2, %v1040_v29 }
 0x2e4   : > { %v1088_v8 = vsel %vm1056_vm3, %v1040_v29, %v1072_v54 }
 0x2e5   : > { %v2493_v45 = vadd.f32 %v1088_v8, %v2257_v24 }
 0x2e7   : > { %v1116_v25 = vmax.f32 %v1112_v32, %v2493_v45 }
 0x2e9   : > { %v1770_v38 = vpop.eup %1769  ;;  %v1119_v23 = vmax.f32 %v1116_v25, %v1117_v56 }
 0x2ea   : > { %v888_v50 = vmul.f32 %v1770_v38, %v2355_v6  ;;  %v889_v34 = vmul.f32 %v1770_v38, %v2357_v11  ;;  %v890_v26 = vmul.f32 %v1770_v38, %v2364_v19  ;;  %v891_v3 = vmul.f32 %v1770_v38, %v2373_v43 }
 0x2eb   : > { %v1120_v15 = vmax.f32 %v1118_v57, %v1119_v23  ;;  %v892_v39 = vmul.f32 %v1770_v38, %v2382_v61  ;;  %v893_v42 = vmul.f32 %v1770_v38, %v2395_v10  ;;  %v894_v24 = vmul.f32 %v1770_v38, %v2401_v63 }
 0x2ec   : > { %v1667_v62 = vpack.c.bf16 %v889_v34, %v888_v50  ;;  %v1670_v41 = vpack.c.bf16 %v891_v3, %v890_v26  ;;  %v895_v14 = vmul.f32 %v1770_v38, %v2413_v18  ;;  %v896_v56 = vmul.f32 %v1770_v38, %v2427_v59 }
 0x2ed   : > { %v1121_v6 = vrot.slane %v1120_v15, 4  ;;  %v1673_v44 = vpack.c.bf16 %v893_v42, %v892_v39  ;;  %v897_v11 = vmul.f32 %v1770_v38, %v2440_v60  ;;  %v898_v19 = vmul.f32 %v1770_v38, %v2451_v12 }
 0x2ee   : > { %1668 = vmatpush3.bf16.msra.mxu0 %v1667_v62  ;;  %v1676_v43 = vpack.c.bf16 %v895_v14, %v894_v24  ;;  %v899_v61 = vmul.f32 %v1770_v38, %v2456_v48  ;;  %v900_v10 = vmul.f32 %v1770_v38, %v2462_v9  ;;  %v901_v57 = vmul.f32 %v1770_v38, %v1764_v36 }
 0x2ef   : > { %v1122_v63 = vmax.f32 %v1120_v15, %v1121_v6  ;;  %1669 = vmatprep.subr.bf16.mxu0 %v1875_v20  ;;  %v1679_v31 = vpack.c.bf16 %v897_v11, %v896_v56  ;;  %v902_v18 = vmul.f32 %v1770_v38, %v2467_v37  ;;  %v903_v59 = vmul.f32 %v1770_v38, %v1768_v21 }
 0x2f0   : > { %v1682_v53 = vpack.c.bf16 %v899_v61, %v898_v19  ;;  %v1685_v13 = vpack.c.bf16 %v901_v57, %v900_v10 }
 0x2f1   : > { %v1123_v16 = vrot.slane %v1122_v63, 2  ;;  %v1688_v60 = vpack.c.bf16 %v903_v59, %v902_v18 }
 0x2f2   : > { %1671 = vmatpush3.bf16.msra.mxu0 %v1670_v41 }
 0x2f3   : > { %v1124_v12 = vmax.f32 %v1122_v63, %v1123_v16  ;;  %1672 = vmatprep.subr.bf16.mxu0 %v1875_v20 }
 0x2f5   : > { %v1125_v4 = vrot.slane %v1124_v12, 1 }
 0x2f6   : > { %1674 = vmatpush3.bf16.msra.mxu0 %v1673_v44 }
 0x2f7   : > { %v2512_v48 = vmax.f32 %v1124_v12, %v1125_v4  ;;  %1675 = vmatprep.subr.bf16.mxu0 %v1875_v20 }
 0x2f9   : > { %v1127_v9 = vsub.f32 %v2353_v33, %v2512_v48  ;;  %v1128_v36 = vsub.f32 %v2367_v58, %v2512_v48  ;;  %v1129_v37 = vsub.f32 %v2481_v7, %v2512_v48  ;;  %v1130_v21 = vsub.f32 %v2380_v17, %v2512_v48 }
 0x2fa   : > { %v1131_v0 = vsub.f32 %v2350_v40, %v2512_v48  ;;  %v1132_v30 = vsub.f32 %v2392_v55, %v2512_v48  ;;  %v1133_v29 = vsub.f32 %v2477_v2, %v2512_v48  ;;  %v1134_v33 = vsub.f32 %v2388_v46, %v2512_v48  ;;  %1677 = vmatpush3.bf16.msra.mxu0 %v1676_v43 }
 0x2fb   : > { %v1135_v58 = vsub.f32 %v2416_v1, %v2512_v48  ;;  %v1136_v7 = vsub.f32 %v2419_v35, %v2512_v48  ;;  %v1137_v17 = vsub.f32 %v2484_v5, %v2512_v48  ;;  %v1138_v40 = vsub.f32 %v2422_v22, %v2512_v48  ;;  %1678 = vmatprep.subr.bf16.mxu0 %v1875_v20 }
 0x2fc   : > { %v1139_v55 = vsub.f32 %v2433_v47, %v2512_v48  ;;  %v1140_v46 = vsub.f32 %v2448_v52, %v2512_v48  ;;  %v1141_v1 = vsub.f32 %v2493_v45, %v2512_v48  ;;  %v1142_v35 = vsub.f32 %v2459_v51, %v2512_v48 }
 0x2fd   : > { %v1143_v2 = vmul.f32 1.442695, %v1127_v9  ;;  %v1145_v54 = vmul.f32 1.442695, %v1128_v36  ;;  %v1147_v5 = vmul.f32 1.442695, %v1129_v37 }
 0x2fe   : > { %1680 = vmatpush3.bf16.msra.mxu0 %v1679_v31  ;;  %v1149_v22 = vmul.f32 1.442695, %v1130_v21  ;;  %v1151_v47 = vmul.f32 1.442695, %v1131_v0  ;;  %v1153_v52 = vmul.f32 1.442695, %v1132_v30 }
 0x2ff   : > { %1771 = vpow2.f32 %v1143_v2  ;;  %1681 = vmatprep.subr.bf16.mxu0 %v1875_v20  ;;  %v1155_v49 = vmul.f32 1.442695, %v1133_v29  ;;  %v1157_v51 = vmul.f32 1.442695, %v1134_v33  ;;  %v1159_v32 = vmul.f32 1.442695, %v1135_v58 }
 0x300   : > { %1773 = vpow2.f32 %v1145_v54  ;;  %v1161_v38 = vmul.f32 1.442695, %v1136_v7  ;;  %v1163_v34 = vmul.f32 1.442695, %v1137_v17  ;;  %v1165_v15 = vmul.f32 1.442695, %v1138_v40 }
 0x301   : > { %1775 = vpow2.f32 %v1147_v5  ;;  %v1167_v24 = vmul.f32 1.442695, %v1139_v55  ;;  %v1169_v14 = vmul.f32 1.442695, %v1140_v46  ;;  %v1171_v44 = vmul.f32 1.442695, %v1141_v1 }
 0x302   : > { %1683 = vmatpush3.bf16.msra.mxu0 %v1682_v53  ;;  %1777 = vpow2.f32 %v1149_v22  ;;  %v1173_v43 = vmul.f32 1.442695, %v1142_v35 }
 0x303   : > { %1684 = vmatprep.subr.bf16.mxu0 %v1875_v20  ;;  %1779 = vpow2.f32 %v1151_v47 }
 0x304   : > { %1781 = vpow2.f32 %v1153_v52 }
 0x305   : > { %1783 = vpow2.f32 %v1155_v49 }
 0x306   : > { %1686 = vmatpush3.bf16.msra.mxu0 %v1685_v13  ;;  %1785 = vpow2.f32 %v1157_v51 }
 0x307   : > { %1687 = vmatprep.subr.bf16.mxu0 %v1875_v20  ;;  %1787 = vpow2.f32 %v1159_v32 }
 0x308   : > { %1789 = vpow2.f32 %v1161_v38 }
 0x309   : > { %v1772_v28 = vpop.eup %1771  ;;  %1791 = vpow2.f32 %v1163_v34  ;;  %v1214_v34 = vrot.slane %v2036_v27, 4 }
 0x30a   : > { %v1774_v8 = vpop.eup %1773  ;;  %1689 = vmatpush3.bf16.msra.mxu0 %v1688_v60  ;;  %1793 = vpow2.f32 %v1165_v15 }
 0x30b   : > { %v1175_v45 = vadd.f32 %v1774_v8, %v1772_v28  ;;  %v1776_v25 = vpop.eup %1775  ;;  %1795 = vpow2.f32 %v1167_v24 }
 0x30c   : > { %v1778_v50 = vpop.eup %1777  ;;  %1797 = vpow2.f32 %v1169_v14 }
 0x30d   : > { %v1176_v23 = vadd.f32 %v1776_v25, %v1175_v45  ;;  %1640 = vmatmul.mubr.f32.vlgmr.msra.gmra.mrb[16].mxu0 %v2036_v27  ;;  %v1780_v3 = vpop.eup %1779  ;;  %1799 = vpow2.f32 %v1171_v44 }
 0x30e   : > { %v1782_v42 = vpop.eup %1781  ;;  %1801 = vpow2.f32 %v1173_v43 }
 0x30f   : > { %v1177_v26 = vadd.f32 %v1778_v50, %v1176_v23  ;;  %v1784_v41 = vpop.eup %1783 }
 0x310   : > { %v1786_v6 = vpop.eup %1785 }
 0x311   : > { %v1178_v39 = vadd.f32 %v1780_v3, %v1177_v26  ;;  %v1788_v19 = vpop.eup %1787 }
 0x312   : > { %v1790_v10 = vpop.eup %1789 }
 0x313   : > { %v1179_v62 = vadd.f32 %v1782_v42, %v1178_v39  ;;  %v1792_v63 = vpop.eup %1791 }
 0x314   : > { %v1794_v18 = vpop.eup %1793 }
 0x315   : > { %v1180_v56 = vadd.f32 %v1784_v41, %v1179_v62  ;;  %v1796_v53 = vpop.eup %1795 }
 0x316   : > { %v1798_v16 = vpop.eup %1797 }
 0x317   : > { %v1181_v11 = vadd.f32 %v1786_v6, %v1180_v56  ;;  %v1800_v12 = vpop.eup %1799 }
 0x318   : > { %v1802_v48 = vpop.eup %1801 }
 0x319   : > { %v1182_v61 = vadd.f32 %v1788_v19, %v1181_v11 }
 0x31b   : > { %v1183_v57 = vadd.f32 %v1790_v10, %v1182_v61 }
 0x31d   : > { %v1184_v31 = vadd.f32 %v1792_v63, %v1183_v57 }
 0x31f   : > { %v1185_v59 = vadd.f32 %v1794_v18, %v1184_v31 }
 0x321   : > { %v1186_v13 = vadd.f32 %v1796_v53, %v1185_v59 }
 0x323   : > { %v1187_v60 = vadd.f32 %v1798_v16, %v1186_v13 }
 0x325   : > { %v1188_v4 = vadd.f32 %v1800_v12, %v1187_v60 }
 0x327   : > { %v1189_v9 = vadd.f32 %v1802_v48, %v1188_v4 }
 0x329   : > { %v1190_v36 = vrot.slane %v1189_v9, 4 }
 0x32b   : > { %v1191_v37 = vadd.f32 %v1190_v36, %v1189_v9 }
 0x32d   : > { %v1192_v21 = vrot.slane %v1191_v37, 2 }
 0x32f   : > { %v1193_v0 = vadd.f32 %v1192_v21, %v1191_v37 }
 0x331   : > { %v1194_v30 = vrot.slane %v1193_v0, 1 }
 0x333   : > { %v1195_v29 = vadd.f32 %v1194_v30, %v1193_v0 }
 0x335   : > { %1803 = vrcp.f32 %v1195_v29 }
 0x33f   : > { %v1804_v33 = vpop.eup %1803 }
 0x340   : > { %v1197_v58 = vmul.f32 %v1804_v33, %v1772_v28  ;;  %v1198_v7 = vmul.f32 %v1804_v33, %v1774_v8  ;;  %v1199_v17 = vmul.f32 %v1804_v33, %v1776_v25  ;;  %v1200_v40 = vmul.f32 %v1804_v33, %v1778_v50 }
 0x341   : > { %v1201_v55 = vmul.f32 %v1804_v33, %v1780_v3  ;;  %v1202_v46 = vmul.f32 %v1804_v33, %v1782_v42  ;;  %v1203_v1 = vmul.f32 %v1804_v33, %v1784_v41  ;;  %v1204_v35 = vmul.f32 %v1804_v33, %v1786_v6 }
 0x342   : > { %v1643_v2 = vpack.c.bf16 %v1198_v7, %v1197_v58  ;;  %v1646_v54 = vpack.c.bf16 %v1200_v40, %v1199_v17  ;;  %v1205_v5 = vmul.f32 %v1804_v33, %v1788_v19  ;;  %v1206_v22 = vmul.f32 %v1804_v33, %v1790_v10 }
 0x343   : > { %v1649_v47 = vpack.c.bf16 %v1202_v46, %v1201_v55  ;;  %v1652_v52 = vpack.c.bf16 %v1204_v35, %v1203_v1  ;;  %v1207_v49 = vmul.f32 %v1804_v33, %v1792_v63  ;;  %v1208_v51 = vmul.f32 %v1804_v33, %v1794_v18 }
 0x344   : > { %1644 = vmatpush3.bf16.msra.mxu1 %v1643_v2  ;;  %v1655_v32 = vpack.c.bf16 %v1206_v22, %v1205_v5  ;;  %v1209_v45 = vmul.f32 %v1804_v33, %v1796_v53  ;;  %v1210_v38 = vmul.f32 %v1804_v33, %v1798_v16  ;;  %v1211_v28 = vmul.f32 %v1804_v33, %v1800_v12 }
 0x345   : > { %1645 = vmatprep.subr.bf16.mxu1 %v1875_v20  ;;  %v1658_v8 = vpack.c.bf16 %v1208_v51, %v1207_v49  ;;  %v1212_v25 = vmul.f32 %v1804_v33, %v1802_v48 }
 0x346   : > { %v1661_v23 = vpack.c.bf16 %v1210_v38, %v1209_v45 }
 0x347   : > { %v1664_v50 = vpack.c.bf16 %v1212_v25, %v1211_v28 }
 0x348   : > { %1647 = vmatpush3.bf16.msra.mxu1 %v1646_v54 }
 0x349   : > { %1648 = vmatprep.subr.bf16.mxu1 %v1875_v20 }
 0x34c   : > { %1650 = vmatpush3.bf16.msra.mxu1 %v1649_v47 }
 0x34d   : > { %1651 = vmatprep.subr.bf16.mxu1 %v1875_v20  ;;  %v1361_v24 = vpop.permute.xlu1 %1360 }
 0x350   : > { %1653 = vmatpush3.bf16.msra.mxu1 %v1652_v52 }
 0x351   : > { %1654 = vmatprep.subr.bf16.mxu1 %v1875_v20 }
 0x354   : > { %1656 = vmatpush3.bf16.msra.mxu1 %v1655_v32 }
 0x355   : > { %1657 = vmatprep.subr.bf16.mxu1 %v1875_v20 }
 0x358   : > { %1659 = vmatpush3.bf16.msra.mxu1 %v1658_v8 }
 0x359   : > { %1660 = vmatprep.subr.bf16.mxu1 %v1875_v20 }
 0x35c   : > { %1662 = vmatpush3.bf16.msra.mxu1 %v1661_v23 }
 0x35d   : > { %1663 = vmatprep.subr.bf16.mxu1 %v1875_v20 }
 0x360   : > { %1665 = vmatpush3.bf16.msra.mxu1 %v1664_v50 }
 0x363   : > { %1605 = vmatmul.mubr.f32.vlgmr.msra.gmra.mrb[2].mxu1 %v1214_v34 }
 0x3e0   : > { %v1352_v26 = vpop.f32.mrb[16].mxu0 }
 0x3e1   : > { %v1641_v3 = vpop.f32.mrb[17].mxu0 }
 0x436   : > { %v1282_v15 = vpop.f32.mrb[2].mxu1 }
 0x437   : > { %v1353_v39 = vadd.f32 %v1352_v26, %v1282_v15  ;;  %v1606_v42 = vpop.f32.mrb[3].mxu1 }
 0x439   : > { %v1356_v62 = vmul.f32 0.5, %v1353_v39 }
 0x43b   : > { %v1363_v41 = vadd.f32 %v1361_v24, %v1356_v62 }
 0x43d   : > { %v1365_v14 = vmul.f32 1.442695, %v1363_v41  ;;  %vm1364_vm0 = vcmp.gt.f32.partialorder %v1363_v41, 0.0 }
 0x43f   : > { %1805 = vpow2.f32 %v1365_v14 }
 0x449   : > { %v1806_v20 = vpop.eup %1805 }
 0x44a   : > { %v1483_v56 = vadd.f32 -1.0, %v1806_v20 }
 0x44c   : > { %v1368_v27 = vsel %vm1364_vm0, %v1363_v41, %v1483_v56 }
 0x44d   : > { %1369 = vst [vmem:[%s312_s21] sm:$0xf] %v1368_v27 }
 0x44e   : > { %1820 = shalt.err (!%p1817_p4)
}
 0x44f   : > { %s1821_s17 = scalar_lea.hbm %s2565_s25, 64  ;;  %s1825_s20 = scalar_lea.hbm %s2615_s8, 128 }
 0x450   : > { %p1822_p7 = scmp.ne.s32.totalorder %s2565_s25, %s1821_s17  ;;  %p1826_p10 = scmp.lt.u32.totalorder %s2565_s25, %s2615_s8 }
 0x451   : > { %p1827_p11 = scmp.lt.u32.totalorder %s1825_s20, %s1821_s17  ;;  %p1829_p13 = scmp.lt.u32.totalorder %s1821_s17, %s2565_s25 }
 0x452   : > { %p1823_p8 = pnand %p1822_p7, %p1960_p5 }
 0x453   : > { %p1828_p12 = por %p1827_p11, %p1826_p10 }
 0x454   : > { %p1824_p9 = pneg %p1823_p8 }
 0x455   : > { %p1830_p0 = por %p1829_p13, %p1828_p12 }
 0x457   : > { %p1831_p1 = pnand %p1830_p0, %p1824_p9 }
 0x459   : > { %1834 = shalt.err (!%p1831_p1)
}
 0x45a   : > { %1691 = dma.vmem_to_hbm [thread:$0]  (%p1960_p5), %s2567_s22, 64, %s2565_s25, %s1371_s26  }
 0x45b PF: > { %p1697_p2 = scmp.ge.s32.totalorder %s1869_s30, 2  ;;  %s1396_s24 = sand.u32 1, %s1857_s27  }
 0x45c   : > { %s1397_s10 = scalar_lea.sflag [#allocation3], %s1396_s24 }
 0x45d   : > { %p1694_p3 = pnand %p1697_p2, %p1964_p6 }
 0x45f   : > { %1852 = dma.done.wait (!%p1694_p3), %s1397_s10, 64  }
 0x460   : > { %1854 = vsyncadd (!%p1694_p3), %s1397_s10, 4294967232  ;;  %p18_p4 = scmp.ge.s32.totalorder %s1947_s11, 4   ;;  %s2618_s27 = smov %s1861_s28 }
 0x461   : > { %s2619_s28 = smov %s1865_s29  ;;  %s2620_s29 = smov %s1958_s14 }
 0x462   : > { %s2621_s30 = smov %s1947_s11  ;;  %20 = sbr.rel (!%p18_p4) target bundleno = 3 (0x3), region = 90 }
 0x469   :  { %1402 = vsyncpa [#allocation3], 1 }
 0x46a   :  { %1404 = vsyncpa [#allocation3 + $0x1], 1 }

</bundles_post_ra>
